<compile_context>
chip_gen: v7x
topology: tpu7x:2x2x1
jax: 0.10.0
libtpu: 0.0.40
codegen_flags: <defaults>
</compile_context>

<pallas_src>
import functools

import jax
import jax.numpy as jnp
from jax.experimental import pallas as pl
from jax.experimental.pallas import tpu as pltpu

STATE_DIM = 29
ACTION_DIM = 4
HIDDEN1 = 700
HIDDEN2 = 500
MAX_ACTION = 6.0

# Padded (lane/sublane aligned) shapes seen by the kernel.
P_STATE = 32    # 29  -> 32
P_H1 = 768      # 700 -> 768  (multiple of 256: clean MXU passes on v6e/v7x)
P_H2 = 512      # 500 -> 512
P_ACT = 128     # 4   -> 128  (lane-dense output block)


def _actor_kernel(x_ref, w1_ref, b1_ref, w2_ref, b2_ref, w3_ref, b3_ref,
                  o_ref, *, max_action):
    # Layer 1: (TB, 32) bf16 @ (32, 768) bf16 -> f32 acc, bias + ReLU in f32.
    h1 = jnp.dot(x_ref[...], w1_ref[...], preferred_element_type=jnp.float32)
    h1 = jnp.maximum(h1 + b1_ref[...], 0.0)

    # Layer 2: (TB, 768) @ (768, 512) -> f32 acc, bias + ReLU in f32.
    h2 = jnp.dot(h1.astype(jnp.bfloat16), w2_ref[...],
                 preferred_element_type=jnp.float32)
    h2 = jnp.maximum(h2 + b2_ref[...], 0.0)

    # Layer 3: (TB, 512) @ (512, 128) -> f32 acc, bias + tanh scaling in f32.
    y = jnp.dot(h2.astype(jnp.bfloat16), w3_ref[...],
                preferred_element_type=jnp.float32)
    y = y + b3_ref[...]
    o_ref[...] = (max_action * jnp.tanh(y)).astype(o_ref.dtype)


def _pad2(a, rows, cols, dtype):
    out = jnp.zeros((rows, cols), dtype)
    return out.at[:a.shape[0], :a.shape[1]].set(a.astype(dtype))


def prepare_params(params):
    """One-time padding + bf16 cast of the (in,out) weights; biases stay f32."""
    w1, b1, w2, b2, w3, b3 = params
    return (
        _pad2(w1, P_STATE, P_H1, jnp.bfloat16), _pad2(b1, 1, P_H1, jnp.float32),
        _pad2(w2, P_H1, P_H2, jnp.bfloat16),    _pad2(b2, 1, P_H2, jnp.float32),
        _pad2(w3, P_H2, P_ACT, jnp.bfloat16),   _pad2(b3, 1, P_ACT, jnp.float32),
    )


def actor_forward(x, prepared_params, max_action=MAX_ACTION, block_batch=256):
    """Full Actor forward pass as a single batch-tiled Pallas kernel."""
    w1, b1, w2, b2, w3, b3 = prepared_params
    batch = x.shape[0]

    # Batch tile: whole (8-aligned) batch if small, else block_batch rows per
    # grid step (grid axis is "parallel" -> split across TCs on v7x megacore).
    if batch <= block_batch:
        tb = max(8, ((batch + 7) // 8) * 8)
    else:
        tb = block_batch
    padded_batch = ((batch + tb - 1) // tb) * tb
    nb = padded_batch // tb

    # Zero-pad input to (padded_batch, 32) and cast matmul input to bf16.
    xp = jnp.zeros((padded_batch, P_STATE), jnp.bfloat16)
    xp = xp.at[:batch, :STATE_DIM].set(x.astype(jnp.bfloat16))

    resident = lambda i: (0, 0)   # weights/biases: same block every grid step

    out_padded = pl.pallas_call(
        functools.partial(_actor_kernel, max_action=max_action),
        out_shape=jax.ShapeDtypeStruct((padded_batch, P_ACT), jnp.float32),
        grid_spec=pltpu.PrefetchScalarGridSpec(
            num_scalar_prefetch=0,
            grid=(nb,),
            in_specs=[
                pl.BlockSpec((tb, P_STATE), lambda i: (i, 0)),   # x tile
                pl.BlockSpec((P_STATE, P_H1), resident),         # w1
                pl.BlockSpec((1, P_H1), resident),               # b1
                pl.BlockSpec((P_H1, P_H2), resident),            # w2
                pl.BlockSpec((1, P_H2), resident),               # b2
                pl.BlockSpec((P_H2, P_ACT), resident),           # w3
                pl.BlockSpec((1, P_ACT), resident),              # b3
            ],
            out_specs=pl.BlockSpec((tb, P_ACT), lambda i: (i, 0)),
        ),
        compiler_params=pltpu.CompilerParams(
            dimension_semantics=("parallel",)),
    )(xp, w1, b1, w2, b2, w3, b3)

    # Drop batch padding and the padded action lanes (lane-dense store, cheap
    # wrapper-side slice).
    return out_padded[:batch, :ACTION_DIM]


def init_params(key):
    """PyTorch-style nn.Linear init (uniform +/- 1/sqrt(fan_in)).
    Weights are (in, out) so the kernel computes y = x @ W + b directly."""
    ks = jax.random.split(key, 6)

    def lin(kw, kb, fan_in, fan_out):
        bound = 1.0 / jnp.sqrt(fan_in)
        w = jax.random.uniform(kw, (fan_in, fan_out), jnp.float32, -bound, bound)
        b = jax.random.uniform(kb, (1, fan_out), jnp.float32, -bound, bound)
        return w, b

    w1, b1 = lin(ks[0], ks[1], STATE_DIM, HIDDEN1)
    w2, b2 = lin(ks[2], ks[3], HIDDEN1, HIDDEN2)
    w3, b3 = lin(ks[4], ks[5], HIDDEN2, ACTION_DIM)
    return (w1, b1, w2, b2, w3, b3)


def actor_reference(x, params, max_action=MAX_ACTION):
    """Pure-JAX f32 reference matching the PyTorch module."""
    w1, b1, w2, b2, w3, b3 = params
    h1 = jnp.maximum(x @ w1 + b1, 0.0)
    h2 = jnp.maximum(h1 @ w2 + b2, 0.0)
    return max_action * jnp.tanh(h2 @ w3 + b3)


if __name__ == "__main__":
    key = jax.random.PRNGKey(0)
    k_params, k_x = jax.random.split(key)

    params = init_params(k_params)
    prepared = prepare_params(params)

    batch = 8
    x = jax.random.normal(k_x, (batch, STATE_DIM), jnp.float32)

    out = jax.block_until_ready(actor_forward(x, prepared))

    ref = jax.block_until_ready(actor_reference(x, params))
    assert out.shape == (batch, ACTION_DIM)
    # bf16 matmul inputs (f32 accumulation) -> loosened tolerance vs f32 ref.
    max_err = float(jnp.max(jnp.abs(out - ref)))
    assert jnp.allclose(out, ref, atol=5e-2, rtol=5e-2), max_err

    print("KERNEL_OK")
</pallas_src>

<mosaic_0001>
module attributes {stable_mosaic.version = 11 : i64} {
  func.func @_actor_kernel(%arg0: i32, %arg1: memref<8x32xbf16, #tpu.memory_space<vmem>>, %arg2: memref<32x768xbf16, #tpu.memory_space<vmem>>, %arg3: memref<1x768xf32, #tpu.memory_space<vmem>>, %arg4: memref<768x512xbf16, #tpu.memory_space<vmem>>, %arg5: memref<1x512xf32, #tpu.memory_space<vmem>>, %arg6: memref<512x128xbf16, #tpu.memory_space<vmem>>, %arg7: memref<1x128xf32, #tpu.memory_space<vmem>>, %arg8: memref<8x128xf32, #tpu.memory_space<vmem>>) attributes {dimension_semantics = [#tpu.dimension_semantics<parallel>], iteration_bounds = array<i64: 1>, scalar_prefetch = 0 : i64, scratch_operands = 0 : i64, tpu.core_type = #tpu.core_type<tc>, window_params = [{transform_indices = @transform_0, window_bounds = array<i64: 8, 32>}, {pipeline_mode = #tpu.pipeline_mode<synchronous>, transform_indices = @transform_1, window_bounds = array<i64: 32, 768>}, {pipeline_mode = #tpu.pipeline_mode<synchronous>, transform_indices = @transform_2, window_bounds = array<i64: 1, 768>}, {pipeline_mode = #tpu.pipeline_mode<synchronous>, transform_indices = @transform_3, window_bounds = array<i64: 768, 512>}, {pipeline_mode = #tpu.pipeline_mode<synchronous>, transform_indices = @transform_4, window_bounds = array<i64: 1, 512>}, {pipeline_mode = #tpu.pipeline_mode<synchronous>, transform_indices = @transform_5, window_bounds = array<i64: 512, 128>}, {pipeline_mode = #tpu.pipeline_mode<synchronous>, transform_indices = @transform_6, window_bounds = array<i64: 1, 128>}, {transform_indices = @transform_7, window_bounds = array<i64: 8, 128>}]} {
    %c0 = arith.constant 0 : index
    %c0_0 = arith.constant 0 : index
    %0 = vector.load %arg1[%c0, %c0_0] : memref<8x32xbf16, #tpu.memory_space<vmem>>, vector<8x32xbf16>
    %c0_1 = arith.constant 0 : index
    %c0_2 = arith.constant 0 : index
    %1 = vector.load %arg2[%c0_1, %c0_2] : memref<32x768xbf16, #tpu.memory_space<vmem>>, vector<32x768xbf16>
    %cst = arith.constant dense<0.000000e+00> : vector<8x768xf32>
    %2 = tpu.matmul %0, %1, %cst {dimension_numbers = #tpu.dot_dimension_numbers<[1], [0], [0], [1], [0, 0, 1, 1], [], []>} : vector<8x32xbf16>, vector<32x768xbf16>, vector<8x768xf32> -> vector<8x768xf32>
    %c0_3 = arith.constant 0 : index
    %c0_4 = arith.constant 0 : index
    %3 = vector.load %arg3[%c0_3, %c0_4] : memref<1x768xf32, #tpu.memory_space<vmem>>, vector<1x768xf32>
    %4 = vector.broadcast %3 : vector<1x768xf32> to vector<8x768xf32>
    %5 = arith.addf %2, %4 : vector<8x768xf32>
    %cst_5 = arith.constant 0.000000e+00 : f32
    %6 = vector.broadcast %cst_5 : f32 to vector<8x768xf32>
    %7 = arith.maximumf %5, %6 : vector<8x768xf32>
    %8 = arith.truncf %7 : vector<8x768xf32> to vector<8x768xbf16>
    %c0_6 = arith.constant 0 : index
    %c0_7 = arith.constant 0 : index
    %9 = vector.load %arg4[%c0_6, %c0_7] : memref<768x512xbf16, #tpu.memory_space<vmem>>, vector<768x512xbf16>
    %cst_8 = arith.constant dense<0.000000e+00> : vector<8x512xf32>
    %10 = tpu.matmul %8, %9, %cst_8 {dimension_numbers = #tpu.dot_dimension_numbers<[1], [0], [0], [1], [0, 0, 1, 1], [], []>} : vector<8x768xbf16>, vector<768x512xbf16>, vector<8x512xf32> -> vector<8x512xf32>
    %c0_9 = arith.constant 0 : index
    %c0_10 = arith.constant 0 : index
    %11 = vector.load %arg5[%c0_9, %c0_10] : memref<1x512xf32, #tpu.memory_space<vmem>>, vector<1x512xf32>
    %12 = vector.broadcast %11 : vector<1x512xf32> to vector<8x512xf32>
    %13 = arith.addf %10, %12 : vector<8x512xf32>
    %cst_11 = arith.constant 0.000000e+00 : f32
    %14 = vector.broadcast %cst_11 : f32 to vector<8x512xf32>
    %15 = arith.maximumf %13, %14 : vector<8x512xf32>
    %16 = arith.truncf %15 : vector<8x512xf32> to vector<8x512xbf16>
    %c0_12 = arith.constant 0 : index
    %c0_13 = arith.constant 0 : index
    %17 = vector.load %arg6[%c0_12, %c0_13] : memref<512x128xbf16, #tpu.memory_space<vmem>>, vector<512x128xbf16>
    %cst_14 = arith.constant dense<0.000000e+00> : vector<8x128xf32>
    %18 = tpu.matmul %16, %17, %cst_14 {dimension_numbers = #tpu.dot_dimension_numbers<[1], [0], [0], [1], [0, 0, 1, 1], [], []>} : vector<8x512xbf16>, vector<512x128xbf16>, vector<8x128xf32> -> vector<8x128xf32>
    %c0_15 = arith.constant 0 : index
    %c0_16 = arith.constant 0 : index
    %19 = vector.load %arg7[%c0_15, %c0_16] : memref<1x128xf32, #tpu.memory_space<vmem>>, vector<1x128xf32>
    %20 = vector.broadcast %19 : vector<1x128xf32> to vector<8x128xf32>
    %21 = arith.addf %18, %20 : vector<8x128xf32>
    %22 = math.tanh %21 : vector<8x128xf32>
    %cst_17 = arith.constant 6.000000e+00 : f32
    %23 = vector.broadcast %cst_17 : f32 to vector<8x128xf32>
    %24 = arith.mulf %23, %22 : vector<8x128xf32>
    %c0_18 = arith.constant 0 : index
    %c0_19 = arith.constant 0 : index
    %25 = vector.load %arg8[%c0_18, %c0_19] : memref<8x128xf32, #tpu.memory_space<vmem>>, vector<8x128xf32>
    tpu.vector_store %arg8[%c0_18, %c0_19], %24 {strides = array<i32>} : memref<8x128xf32, #tpu.memory_space<vmem>>, vector<8x128xf32>,
    return
  }
  func.func @transform_0(%arg0: i32) -> (i32, i32) {
    %c0_i32 = arith.constant 0 : i32
    %c0_i32_0 = arith.constant 0 : i32
    return %arg0, %c0_i32 : i32, i32
  }
  func.func @transform_1(%arg0: i32) -> (i32, i32) {
    %c0_i32 = arith.constant 0 : i32
    %c0_i32_0 = arith.constant 0 : i32
    %c0_i32_1 = arith.constant 0 : i32
    return %c0_i32, %c0_i32_0 : i32, i32
  }
  func.func @transform_2(%arg0: i32) -> (i32, i32) {
    %c0_i32 = arith.constant 0 : i32
    %c0_i32_0 = arith.constant 0 : i32
    %c0_i32_1 = arith.constant 0 : i32
    return %c0_i32, %c0_i32_0 : i32, i32
  }
  func.func @transform_3(%arg0: i32) -> (i32, i32) {
    %c0_i32 = arith.constant 0 : i32
    %c0_i32_0 = arith.constant 0 : i32
    %c0_i32_1 = arith.constant 0 : i32
    return %c0_i32, %c0_i32_0 : i32, i32
  }
  func.func @transform_4(%arg0: i32) -> (i32, i32) {
    %c0_i32 = arith.constant 0 : i32
    %c0_i32_0 = arith.constant 0 : i32
    %c0_i32_1 = arith.constant 0 : i32
    return %c0_i32, %c0_i32_0 : i32, i32
  }
  func.func @transform_5(%arg0: i32) -> (i32, i32) {
    %c0_i32 = arith.constant 0 : i32
    %c0_i32_0 = arith.constant 0 : i32
    %c0_i32_1 = arith.constant 0 : i32
    return %c0_i32, %c0_i32_0 : i32, i32
  }
  func.func @transform_6(%arg0: i32) -> (i32, i32) {
    %c0_i32 = arith.constant 0 : i32
    %c0_i32_0 = arith.constant 0 : i32
    %c0_i32_1 = arith.constant 0 : i32
    return %c0_i32, %c0_i32_0 : i32, i32
  }
  func.func @transform_7(%arg0: i32) -> (i32, i32) {
    %c0_i32 = arith.constant 0 : i32
    %c0_i32_0 = arith.constant 0 : i32
    return %arg0, %c0_i32 : i32, i32
  }
}

</mosaic_0001>

<bundles_post_ra>
// kernel: tpu_custom_call.1
= control target key start
LH: loop header
LB: loop body
LE: loop exit
PB: predicated region body
PF: predicated region fallthrough
CT: control target
= control target key end

     0   :  { %12 = vsyncpa [#allocation3], 0  ;;  %s3055_s0 = inlined_call_operand.hbm [shape: bf16[8,32], index: 0, kind: input, shape index: {}]   ;;  %s3056_s1 = inlined_call_operand.hbm [shape: bf16[32,768], index: 1, kind: input, shape index: {}]   ;;  %s3057_s2 = inlined_call_operand.vmem [shape: f32[1,768], index: 2, kind: input, shape index: {}]   ;;  %s3058_s3 = inlined_call_operand.hbm [shape: bf16[768,512], index: 3, kind: input, shape index: {}]   ;;  %s3059_s4 = inlined_call_operand.vmem [shape: f32[1,512], index: 4, kind: input, shape index: {}]   ;;  %s3060_s5 = inlined_call_operand.hbm [shape: bf16[512,128], index: 5, kind: input, shape index: {}]   ;;  %s3061_s6 = inlined_call_operand.vmem [shape: f32[1,128], index: 6, kind: input, shape index: {}]   ;;  %s3062_s7 = inlined_call_operand.hbm [shape: f32[8,128], index: 7, kind: output, shape index: {}]  }
   0x1   :  { %13 = vsyncpa [#allocation6], 0 }
   0x2   :  { %14 = vsyncpa [#allocation9], 0 }
   0x3   :  { %15 = vsyncpa [#allocation4], 0  ;;  %s2890_s24 = smov [#allocation5]   ;;  %s2772_s28 = scalar_lea.hbm %s3056_s1, 1536 }
   0x4   :  { %s31_s25 = sshll.u32 %s2890_s24, 4  ;;  %p2773_p0 = scmp.ne.s32.totalorder %s3056_s1, %s2772_s28  ;;  %s32_s25 = int_to_ptr.vmem [resolvable:$true] %s31_s25 }
   0x5   :  { %p2776_p1 = scmp.lt.u32.totalorder %s2772_s28, %s3056_s1 }
   0x7   :  { %p2778_p2 = pnand %p2776_p1, %p2773_p0 }
   0x9   :  { %2781 = shalt.err (!%p2778_p2)
}
   0xa   :  { %s2782_s10 = scalar_lea.vmem %s32_s25, 1536  ;;  %p2787_p4 = scmp.lt.s32.totalorder %s32_s25, %s32_s25 }
   0xb   :  { %p2783_p3 = scmp.ne.s32.totalorder %s32_s25, %s2782_s10  ;;  %p2788_p5 = scmp.lt.s32.totalorder %s2782_s10, %s2782_s10 }
   0xd   :  { %p2789_p6 = por %p2788_p5, %p2787_p4 }
   0xf   :  { %p2790_p7 = pnand %p2789_p6, %p2783_p3 }
  0x11   :  { %2793 = shalt.err (!%p2790_p7)
}
  0x12   :  { %s2891_s11 = smov 384   ;;  %s2892_s12 = smov 24  }
  0x13   :  { %37 = dma.hbm_to_vmem [thread:$0]  %s3056_s1, 1536, %s32_s25, [#allocation6], %s2891_s11, %s2891_s11, %s2892_s12  }
  0x14   :  { %s2893_s15 = smov [#allocation2]   ;;  %s2894_s17 = smov [#allocation7]  }
  0x15   :  { %s22_s16 = sshll.u32 %s2893_s15, 4  ;;  %s45_s18 = sshll.u32 %s2894_s17, 4  ;;  %s23_s16 = int_to_ptr.vmem [resolvable:$true] %s22_s16  ;;  %s46_s18 = int_to_ptr.vmem [resolvable:$true] %s45_s18 }
  0x16   :  { %s2794_s21 = scalar_lea.hbm %s3055_s0, 64 }
  0x17   :  { %p2795_p8 = scmp.ne.s32.totalorder %s3055_s0, %s2794_s21  ;;  %p2798_p9 = scmp.lt.u32.totalorder %s2794_s21, %s3055_s0 }
  0x19   :  { %p2800_p10 = pnand %p2798_p9, %p2795_p8 }
  0x1b   :  { %2803 = shalt.err (!%p2800_p10)
}
  0x1c   :  { %s2804_s1 = scalar_lea.vmem %s23_s16, 64  ;;  %p2809_p12 = scmp.lt.s32.totalorder %s23_s16, %s23_s16 }
  0x1d   :  { %p2805_p11 = scmp.ne.s32.totalorder %s23_s16, %s2804_s1  ;;  %p2810_p13 = scmp.lt.s32.totalorder %s2804_s1, %s2804_s1 }
  0x1f   :  { %p2811_p0 = por %p2810_p13, %p2809_p12 }
  0x21   :  { %p2812_p1 = pnand %p2811_p0, %p2805_p11 }
  0x23   :  { %2815 = shalt.err (!%p2812_p1)
}
  0x24   :  { %25 = dma.hbm_to_vmem [thread:$0]  %s3055_s0, 64, %s23_s16, [#allocation3]  }
  0x25   :  { %s2816_s30 = scalar_lea.hbm %s3058_s3, 24576 }
  0x26   :  { %p2817_p2 = scmp.ne.s32.totalorder %s3058_s3, %s2816_s30  ;;  %p2820_p3 = scmp.lt.u32.totalorder %s2816_s30, %s3058_s3 }
  0x28   :  { %p2822_p4 = pnand %p2820_p3, %p2817_p2 }
  0x2a   :  { %2825 = shalt.err (!%p2822_p4)
}
  0x2b   :  { %s2826_s12 = scalar_lea.vmem %s46_s18, 24576  ;;  %p2831_p6 = scmp.lt.s32.totalorder %s46_s18, %s46_s18 }
  0x2c   :  { %p2827_p5 = scmp.ne.s32.totalorder %s46_s18, %s2826_s12  ;;  %p2832_p7 = scmp.lt.s32.totalorder %s2826_s12, %s2826_s12 }
  0x2e   :  { %p2833_p8 = por %p2832_p7, %p2831_p6 }
  0x30   :  { %p2834_p9 = pnand %p2833_p8, %p2827_p5 }
  0x32   :  { %2837 = shalt.err (!%p2834_p9)
}
  0x33   :  { %s2895_s0 = smov 256   ;;  %s2896_s13 = smov 16  }
  0x34   :  { %51 = dma.hbm_to_vmem [thread:$0]  %s3058_s3, 24576, %s46_s18, [#allocation6], %s2895_s0, %s2895_s0, %s2896_s13  }
  0x35   :  { %s2897_s16 = smov [#allocation8]   ;;  %s2838_s21 = scalar_lea.hbm %s3060_s5, 4096 }
  0x36   :  { %s59_s17 = sshll.u32 %s2897_s16, 4  ;;  %p2839_p10 = scmp.ne.s32.totalorder %s3060_s5, %s2838_s21  ;;  %s60_s17 = int_to_ptr.vmem [resolvable:$true] %s59_s17 }
  0x37   :  { %p2842_p11 = scmp.lt.u32.totalorder %s2838_s21, %s3060_s5 }
  0x39   :  { %p2844_p12 = pnand %p2842_p11, %p2839_p10 }
  0x3b   :  { %2847 = shalt.err (!%p2844_p12)
}
  0x3c   :  { %s2848_s1 = scalar_lea.vmem %s60_s17, 4096  ;;  %p2853_p0 = scmp.lt.s32.totalorder %s60_s17, %s60_s17 }
  0x3d   :  { %p2849_p13 = scmp.ne.s32.totalorder %s60_s17, %s2848_s1  ;;  %p2854_p1 = scmp.lt.s32.totalorder %s2848_s1, %s2848_s1 }
  0x3f   :  { %p2855_p2 = por %p2854_p1, %p2853_p0 }
  0x41   :  { %p2856_p3 = pnand %p2855_p2, %p2849_p13 }
  0x43   :  { %2859 = shalt.err (!%p2856_p3)
}
  0x44   :  { %s2898_s3 = smov 64   ;;  %s2899_s18 = smov 4  }
  0x45   :  { %65 = dma.hbm_to_vmem [thread:$0]  %s3060_s5, 4096, %s60_s17, [#allocation9], %s2898_s3, %s2898_s3, %s2899_s18  }
  0x46   :  { %2882 = dma.done.wait [#allocation3], 64  }
  0x47   :  { %2883 = vsyncadd [#allocation3], 4294967232 }
  0x48   :  { %2884 = dma.done.wait [#allocation6], 26112  }
  0x49   :  { %2885 = vsyncadd [#allocation6], 4294941184 }
  0x4a   :  { %2886 = dma.done.wait [#allocation9], 4096  }
  0x4b   :  { %2887 = vsyncadd [#allocation9], 4294963200  ;;  %v2900_v0 = vmov 0   ;;  %v2432_v1 = vld [vmem:[#allocation5 + $0x4] ss:$24 sps:$4 sm:$0xff]   ;;  %vm186_vm0 = vcmask 261120  }
  0x4c   :  { %222 = vmatprep.mubr.bf16.mxu0 %v2900_v0  ;;  %263 = vmatprep.mubr.bf16.mxu1 %v2900_v0  ;;  %v2434_v2 = vld [vmem:[#allocation5] ss:$24 sps:$4 sm:$0xff]   ;;  %v2435_v3 = vld [vmem:[#allocation5 + $0x34] ss:$24 sps:$4 sm:$0xff]   ;;  %v2437_v4 = vld [vmem:[#allocation5 + $0x30] ss:$24 sps:$4 sm:$0xff]  }
  0x4d   :  { %190 = vmatprep.subr.bf16.mxu0 %v2432_v1  ;;  %v2438_v5 = vld [vmem:[#allocation5 + $0xc] ss:$24 sps:$4 sm:$0xff]   ;;  %v2440_v6 = vld [vmem:[#allocation5 + $0x8] ss:$24 sps:$4 sm:$0xff]   ;;  %v81_v7 = vld [vmem:[#allocation2] sm:$0xf] }
  0x4e   :  { %191 = vmatpush1.bf16.msra.mxu0 %v2434_v2  ;;  %231 = vmatprep.subr.bf16.mxu1 %v2438_v5  ;;  %v2441_v8 = vld [vmem:[#allocation5 + $0x3c] ss:$24 sps:$4 sm:$0xff]   ;;  %v2443_v9 = vld [vmem:[#allocation5 + $0x38] ss:$24 sps:$4 sm:$0xff]   ;;  %s2901_s8 = smov [#allocation10]  }
  0x4f   :  { %192 = vmatprep.subr.bf16.mxu0 %v2435_v3  ;;  %232 = vmatpush1.bf16.msra.mxu1 %v2440_v6  ;;  %v2446_v10 = vld [vmem:[#allocation5 + $0x14] ss:$24 sps:$4 sm:$0xff]   ;;  %v2444_v11 = vld [vmem:[#allocation5 + $0x10] ss:$24 sps:$4 sm:$0xff]   ;;  %v2449_v12 = vld [vmem:[#allocation5 + $0x44] ss:$24 sps:$4 sm:$0xff]  }
  0x50   :  { %233 = vmatprep.subr.bf16.mxu1 %v2441_v8  ;;  %v2452_v13 = vld [vmem:[#allocation7 + $0x4] ss:$16 sps:$4 sm:$0xff]   ;;  %v2447_v14 = vld [vmem:[#allocation5 + $0x40] ss:$24 sps:$4 sm:$0xff]   ;;  %v2455_v16 = vld [vmem:[#allocation7 + $0xc] ss:$16 sps:$4 sm:$0xff]  }
  0x51   :  { %v2450_v15 = vld [vmem:[#allocation7] ss:$16 sps:$4 sm:$0xff]   ;;  %v2458_v17 = vld [vmem:[#allocation7 + $0x24] ss:$16 sps:$4 sm:$0xff]   ;;  %v2453_v18 = vld [vmem:[#allocation7 + $0x8] ss:$16 sps:$4 sm:$0xff]  }
  0x52   :  { %193 = vmatpush1.bf16.msra.mxu0 %v2437_v4  ;;  %v2456_v19 = vld [vmem:[#allocation7 + $0x20] ss:$16 sps:$4 sm:$0xff]   ;;  %v2464_v20 = vld [vmem:[#allocation7 + $0x44] ss:$16 sps:$4 sm:$0xff]   ;;  %v2461_v21 = vld [vmem:[#allocation7 + $0x2c] ss:$16 sps:$4 sm:$0xff]  }
  0x53   :  { %272 = vmatprep.subr.bf16.mxu0 %v2446_v10  ;;  %234 = vmatpush1.bf16.msra.mxu1 %v2443_v9  ;;  %v2459_v22 = vld [vmem:[#allocation7 + $0x28] ss:$16 sps:$4 sm:$0xff]   ;;  %v2462_v23 = vld [vmem:[#allocation7 + $0x40] ss:$16 sps:$4 sm:$0xff]   ;;  %v2470_v24 = vld [vmem:[#allocation7 + $0x64] ss:$16 sps:$4 sm:$0xff]  }
  0x54   :  { %1499 = vmatprep.subr.bf16.mxu1 %v2452_v13  ;;  %v2467_v25 = vld [vmem:[#allocation7 + $0x4c] ss:$16 sps:$4 sm:$0xff]   ;;  %v2465_v26 = vld [vmem:[#allocation7 + $0x48] ss:$16 sps:$4 sm:$0xff]   ;;  %v2468_v27 = vld [vmem:[#allocation7 + $0x60] ss:$16 sps:$4 sm:$0xff]  }
  0x55   :  { %2128 = vmatmul.mubr.msk.bf16.vlgmr.msra.gmra.mrb[0].mxu0 %vm186_vm0, %v81_v7  ;;  %v2476_v28 = vld [vmem:[#allocation7 + $0x84] ss:$16 sps:$4 sm:$0xff]   ;;  %v2473_v29 = vld [vmem:[#allocation7 + $0x6c] ss:$16 sps:$4 sm:$0xff]   ;;  %v2471_v30 = vld [vmem:[#allocation7 + $0x68] ss:$16 sps:$4 sm:$0xff]  }
  0x56   :  { %273 = vmatpush1.bf16.msra.mxu0 %v2444_v11  ;;  %304 = vmatprep.mubr.bf16.mxu0 %v2900_v0  ;;  %v2474_v31 = vld [vmem:[#allocation7 + $0x80] ss:$16 sps:$4 sm:$0xff]   ;;  %v2482_v32 = vld [vmem:[#allocation7 + $0xa4] ss:$16 sps:$4 sm:$0xff]   ;;  %v2479_v33 = vld [vmem:[#allocation7 + $0x8c] ss:$16 sps:$4 sm:$0xff]  }
  0x57   :  { %274 = vmatprep.subr.bf16.mxu0 %v2449_v12  ;;  %2129 = vmatmul.mubr.msk.bf16.vlgmr.msra.gmra.mrb[0].mxu1 %vm186_vm0, %v81_v7  ;;  %v2477_v34 = vld [vmem:[#allocation7 + $0x88] ss:$16 sps:$4 sm:$0xff]   ;;  %v2480_v35 = vld [vmem:[#allocation7 + $0xa0] ss:$16 sps:$4 sm:$0xff]   ;;  %v2488_v36 = vld [vmem:[#allocation7 + $0xc4] ss:$16 sps:$4 sm:$0xff]  }
  0x58   :  { %1500 = vmatpush1.bf16.msra.mxu1 %v2450_v15  ;;  %v2485_v37 = vld [vmem:[#allocation7 + $0xac] ss:$16 sps:$4 sm:$0xff]   ;;  %v2483_v38 = vld [vmem:[#allocation7 + $0xa8] ss:$16 sps:$4 sm:$0xff]   ;;  %v2486_v39 = vld [vmem:[#allocation7 + $0xc0] ss:$16 sps:$4 sm:$0xff]  }
  0x59   :  { %1501 = vmatprep.subr.bf16.mxu1 %v2458_v17  ;;  %v2494_v40 = vld [vmem:[#allocation7 + $0xe4] ss:$16 sps:$4 sm:$0xff]   ;;  %v2491_v41 = vld [vmem:[#allocation7 + $0xcc] ss:$16 sps:$4 sm:$0xff]   ;;  %v2489_v42 = vld [vmem:[#allocation7 + $0xc8] ss:$16 sps:$4 sm:$0xff]  }
  0x5a   :  { %275 = vmatpush1.bf16.msra.mxu0 %v2447_v14  ;;  %v2492_v43 = vld [vmem:[#allocation7 + $0xe0] ss:$16 sps:$4 sm:$0xff]   ;;  %v2500_v44 = vld [vmem:[#allocation7 + $0x104] ss:$16 sps:$4 sm:$0xff]   ;;  %v2497_v45 = vld [vmem:[#allocation7 + $0xec] ss:$16 sps:$4 sm:$0xff]  }
  0x5b   :  { %1622 = vmatprep.subr.bf16.mxu0 %v2455_v16  ;;  %v2495_v46 = vld [vmem:[#allocation7 + $0xe8] ss:$16 sps:$4 sm:$0xff]   ;;  %v2498_v47 = vld [vmem:[#allocation7 + $0x100] ss:$16 sps:$4 sm:$0xff]   ;;  %v2506_v48 = vld [vmem:[#allocation7 + $0x124] ss:$16 sps:$4 sm:$0xff]   ;;  %v96_v16 = vlaneseq }
  0x5c   :  { %1502 = vmatpush1.bf16.msra.mxu1 %v2456_v19  ;;  %v2503_v49 = vld [vmem:[#allocation7 + $0x10c] ss:$16 sps:$4 sm:$0xff]   ;;  %v2501_v50 = vld [vmem:[#allocation7 + $0x108] ss:$16 sps:$4 sm:$0xff]   ;;  %v2504_v51 = vld [vmem:[#allocation7 + $0x120] ss:$16 sps:$4 sm:$0xff]  }
  0x5d   :  { %2130 = vmatmul.mubr.msk.bf16.vlgmr.msra.gmra.mrb[4].mxu0 %vm186_vm0, %v81_v7  ;;  %1503 = vmatprep.subr.bf16.mxu1 %v2464_v20  ;;  %v2512_v52 = vld [vmem:[#allocation7 + $0x144] ss:$16 sps:$4 sm:$0xff]   ;;  %v2509_v53 = vld [vmem:[#allocation7 + $0x12c] ss:$16 sps:$4 sm:$0xff]   ;;  %v2510_v54 = vld [vmem:[#allocation7 + $0x140] ss:$16 sps:$4 sm:$0xff]  }
  0x5e   :  { %1623 = vmatpush1.bf16.msra.mxu0 %v2453_v18  ;;  %v2507_v55 = vld [vmem:[#allocation7 + $0x128] ss:$16 sps:$4 sm:$0xff]   ;;  %v2518_v56 = vld [vmem:[#allocation7 + $0x164] ss:$16 sps:$4 sm:$0xff]   ;;  %v2515_v57 = vld [vmem:[#allocation7 + $0x14c] ss:$16 sps:$4 sm:$0xff]  }
  0x5f   :  { %1624 = vmatprep.subr.bf16.mxu0 %v2461_v21  ;;  %v2516_v58 = vld [vmem:[#allocation7 + $0x160] ss:$16 sps:$4 sm:$0xff]   ;;  %v2513_v59 = vld [vmem:[#allocation7 + $0x148] ss:$16 sps:$4 sm:$0xff]   ;;  %v2524_v60 = vld [vmem:[#allocation7 + $0x184] ss:$16 sps:$4 sm:$0xff]  }
  0x60   :  { %1504 = vmatpush1.bf16.msra.mxu1 %v2462_v23  ;;  %v2521_v61 = vld [vmem:[#allocation7 + $0x16c] ss:$16 sps:$4 sm:$0xff]   ;;  %v2522_v62 = vld [vmem:[#allocation7 + $0x180] ss:$16 sps:$4 sm:$0xff]   ;;  %v2519_v63 = vld [vmem:[#allocation7 + $0x168] ss:$16 sps:$4 sm:$0xff]  }
  0x61   :  { %1505 = vmatprep.subr.bf16.mxu1 %v2470_v24  ;;  %v2530_v0 = vld [vmem:[#allocation7 + $0x1a4] ss:$16 sps:$4 sm:$0xff]   ;;  %v2527_v1 = vld [vmem:[#allocation7 + $0x18c] ss:$16 sps:$4 sm:$0xff]   ;;  %v2528_v2 = vld [vmem:[#allocation7 + $0x1a0] ss:$16 sps:$4 sm:$0xff]  }
  0x62   :  { %1625 = vmatpush1.bf16.msra.mxu0 %v2459_v22  ;;  %v2525_v3 = vld [vmem:[#allocation7 + $0x188] ss:$16 sps:$4 sm:$0xff]   ;;  %v2533_v4 = vld [vmem:[#allocation7 + $0x1ac] ss:$16 sps:$4 sm:$0xff]   ;;  %v2536_v6 = vld [vmem:[#allocation7 + $0x1c4] ss:$16 sps:$4 sm:$0xff]  }
  0x63   :  { %1626 = vmatprep.subr.bf16.mxu0 %v2467_v25  ;;  %v2531_v5 = vld [vmem:[#allocation7 + $0x1a8] ss:$16 sps:$4 sm:$0xff]   ;;  %v2539_v7 = vld [vmem:[#allocation7 + $0x1cc] ss:$16 sps:$4 sm:$0xff]   ;;  %v2534_v8 = vld [vmem:[#allocation7 + $0x1c0] ss:$16 sps:$4 sm:$0xff]  }
  0x64   :  { %1506 = vmatpush1.bf16.msra.mxu1 %v2468_v27  ;;  %v2537_v9 = vld [vmem:[#allocation7 + $0x1c8] ss:$16 sps:$4 sm:$0xff]   ;;  %v2542_v10 = vld [vmem:[#allocation7 + $0x1e4] ss:$16 sps:$4 sm:$0xff]   ;;  %v2545_v11 = vld [vmem:[#allocation7 + $0x1ec] ss:$16 sps:$4 sm:$0xff]  }
  0x65   :  { %1507 = vmatprep.subr.bf16.mxu1 %v2476_v28  ;;  %v2540_v12 = vld [vmem:[#allocation7 + $0x1e0] ss:$16 sps:$4 sm:$0xff]   ;;  %v2543_v13 = vld [vmem:[#allocation7 + $0x1e8] ss:$16 sps:$4 sm:$0xff]   ;;  %v2548_v14 = vld [vmem:[#allocation7 + $0x204] ss:$16 sps:$4 sm:$0xff]  }
  0x66   :  { %1627 = vmatpush1.bf16.msra.mxu0 %v2465_v26  ;;  %v2551_v15 = vld [vmem:[#allocation7 + $0x20c] ss:$16 sps:$4 sm:$0xff]   ;;  %v2993_v17 = vshrl.u32 %v96_v16, 7  ;;  %v2999_v19 = vld [vmem:[%s3057_s2] sm:$0x3f]  ;;  %s2105_s9 = sshll.u32 %s2901_s8, 4  ;;  %s2106_s9 = int_to_ptr.vmem [resolvable:$true] %s2105_s9 }
  0x67   :  { %1628 = vmatprep.subr.bf16.mxu0 %v2473_v29  ;;  %v2602_v16 = vld [vmem:[#allocation7 + $0x324] ss:$16 sps:$4 sm:$0xff]   ;;  %s2860_s10 = scalar_lea.vmem %s2106_s9, 128  ;;  %p2865_p5 = scmp.lt.s32.totalorder %s2106_s9, %s2106_s9 }
  0x68   :  { %1508 = vmatpush1.bf16.msra.mxu1 %v2474_v31  ;;  %v98_v18 = vsub.s32 0, %v2993_v17  ;;  %v102_v20 = vsub.s32 1, %v2993_v17  ;;  %v110_v22 = vsub.s32 3, %v2993_v17  ;;  %p2861_p4 = scmp.ne.s32.totalorder %s2106_s9, %s2860_s10  ;;  %p2866_p6 = scmp.lt.s32.totalorder %s2860_s10, %s2860_s10 }
  0x69   :  { %1509 = vmatprep.subr.bf16.mxu1 %v2482_v32 }
  0x6a   :  { %1629 = vmatpush1.bf16.msra.mxu0 %v2471_v30  ;;  %v99_v21 = vrot.slane %v2999_v19, %v98_v18  ;;  %v103_v23 = vrot.slane %v2999_v19, %v102_v20  ;;  %v111_v27 = vrot.slane %v2999_v19, %v110_v22  ;;  %p2867_p7 = por %p2866_p6, %p2865_p5 }
  0x6b   :  { %1630 = vmatprep.subr.bf16.mxu0 %v2479_v33 }
  0x6c   :  { %1510 = vmatpush1.bf16.msra.mxu1 %v2480_v35  ;;  %p2868_p8 = pnand %p2867_p7, %p2861_p4 }
  0x6d   :  { %1511 = vmatprep.subr.bf16.mxu1 %v2488_v36 }
  0x6e   :  { %1631 = vmatpush1.bf16.msra.mxu0 %v2477_v34 }
  0x6f   :  { %1632 = vmatprep.subr.bf16.mxu0 %v2485_v37 }
  0x70   :  { %1512 = vmatpush1.bf16.msra.mxu1 %v2486_v39  ;;  %v2549_v39 = vld [vmem:[#allocation7 + $0x208] ss:$16 sps:$4 sm:$0xff]  }
  0x71   :  { %1513 = vmatprep.subr.bf16.mxu1 %v2494_v40 }
  0x72   :  { %1633 = vmatpush1.bf16.msra.mxu0 %v2483_v38  ;;  %v2546_v38 = vld [vmem:[#allocation7 + $0x200] ss:$16 sps:$4 sm:$0xff]  }
  0x73   :  { %1634 = vmatprep.subr.bf16.mxu0 %v2491_v41 }
  0x74   :  { %1514 = vmatpush1.bf16.msra.mxu1 %v2492_v43  ;;  %v2557_v43 = vld [vmem:[#allocation7 + $0x22c] ss:$16 sps:$4 sm:$0xff]  }
  0x75   :  { %1515 = vmatprep.subr.bf16.mxu1 %v2500_v44 }
  0x76   :  { %1635 = vmatpush1.bf16.msra.mxu0 %v2489_v42  ;;  %v2554_v42 = vld [vmem:[#allocation7 + $0x224] ss:$16 sps:$4 sm:$0xff]  }
  0x77   :  { %1636 = vmatprep.subr.bf16.mxu0 %v2497_v45 }
  0x78   :  { %1516 = vmatpush1.bf16.msra.mxu1 %v2498_v47 }
  0x79   :  { %1517 = vmatprep.subr.bf16.mxu1 %v2506_v48  ;;  %v2552_v48 = vld [vmem:[#allocation7 + $0x220] ss:$16 sps:$4 sm:$0xff]  }
  0x7a   :  { %1637 = vmatpush1.bf16.msra.mxu0 %v2495_v46 }
  0x7b   :  { %1638 = vmatprep.subr.bf16.mxu0 %v2503_v49  ;;  %v2555_v49 = vld [vmem:[#allocation7 + $0x228] ss:$16 sps:$4 sm:$0xff]  }
  0x7c   :  { %1518 = vmatpush1.bf16.msra.mxu1 %v2504_v51  ;;  %v2560_v51 = vld [vmem:[#allocation7 + $0x244] ss:$16 sps:$4 sm:$0xff]  }
  0x7d   :  { %1519 = vmatprep.subr.bf16.mxu1 %v2512_v52  ;;  %v2563_v52 = vld [vmem:[#allocation7 + $0x24c] ss:$16 sps:$4 sm:$0xff]  }
  0x7e   :  { %1639 = vmatpush1.bf16.msra.mxu0 %v2501_v50 }
  0x7f   :  { %1640 = vmatprep.subr.bf16.mxu0 %v2509_v53 }
  0x80   :  { %1520 = vmatpush1.bf16.msra.mxu1 %v2510_v54  ;;  %v2558_v54 = vld [vmem:[#allocation7 + $0x240] ss:$16 sps:$4 sm:$0xff]  }
  0x81   :  { %1521 = vmatprep.subr.bf16.mxu1 %v2518_v56  ;;  %v2566_v56 = vld [vmem:[#allocation7 + $0x264] ss:$16 sps:$4 sm:$0xff]  }
  0x82   :  { %1641 = vmatpush1.bf16.msra.mxu0 %v2507_v55  ;;  %v2561_v55 = vld [vmem:[#allocation7 + $0x248] ss:$16 sps:$4 sm:$0xff]  }
  0x83   :  { %1642 = vmatprep.subr.bf16.mxu0 %v2515_v57  ;;  %v2569_v57 = vld [vmem:[#allocation7 + $0x26c] ss:$16 sps:$4 sm:$0xff]  }
  0x84   :  { %1522 = vmatpush1.bf16.msra.mxu1 %v2516_v58  ;;  %v2564_v58 = vld [vmem:[#allocation7 + $0x260] ss:$16 sps:$4 sm:$0xff]  }
  0x85   :  { %1523 = vmatprep.subr.bf16.mxu1 %v2524_v60  ;;  %v2572_v60 = vld [vmem:[#allocation7 + $0x284] ss:$16 sps:$4 sm:$0xff]  }
  0x86   :  { %1643 = vmatpush1.bf16.msra.mxu0 %v2513_v59  ;;  %v2567_v59 = vld [vmem:[#allocation7 + $0x268] ss:$16 sps:$4 sm:$0xff]  }
  0x87   :  { %1644 = vmatprep.subr.bf16.mxu0 %v2521_v61  ;;  %v2575_v61 = vld [vmem:[#allocation7 + $0x28c] ss:$16 sps:$4 sm:$0xff]  }
  0x88   :  { %1524 = vmatpush1.bf16.msra.mxu1 %v2522_v62  ;;  %v2570_v62 = vld [vmem:[#allocation7 + $0x280] ss:$16 sps:$4 sm:$0xff]  }
  0x89   :  { %1525 = vmatprep.subr.bf16.mxu1 %v2530_v0  ;;  %v2578_v0 = vld [vmem:[#allocation7 + $0x2a4] ss:$16 sps:$4 sm:$0xff]  }
  0x8a   :  { %1645 = vmatpush1.bf16.msra.mxu0 %v2519_v63  ;;  %v2573_v63 = vld [vmem:[#allocation7 + $0x288] ss:$16 sps:$4 sm:$0xff]  }
  0x8b   :  { %1646 = vmatprep.subr.bf16.mxu0 %v2527_v1  ;;  %v2581_v1 = vld [vmem:[#allocation7 + $0x2ac] ss:$16 sps:$4 sm:$0xff]  }
  0x8c   :  { %1526 = vmatpush1.bf16.msra.mxu1 %v2528_v2  ;;  %v2576_v2 = vld [vmem:[#allocation7 + $0x2a0] ss:$16 sps:$4 sm:$0xff]  }
  0x8d   :  { %1527 = vmatprep.subr.bf16.mxu1 %v2536_v6  ;;  %v2582_v6 = vld [vmem:[#allocation7 + $0x2c0] ss:$16 sps:$4 sm:$0xff]  }
  0x8e   :  { %1647 = vmatpush1.bf16.msra.mxu0 %v2525_v3  ;;  %v2579_v3 = vld [vmem:[#allocation7 + $0x2a8] ss:$16 sps:$4 sm:$0xff]  }
  0x8f   :  { %1648 = vmatprep.subr.bf16.mxu0 %v2533_v4  ;;  %v2584_v4 = vld [vmem:[#allocation7 + $0x2c4] ss:$16 sps:$4 sm:$0xff]  }
  0x90   :  { %1528 = vmatpush1.bf16.msra.mxu1 %v2534_v8  ;;  %v2590_v8 = vld [vmem:[#allocation7 + $0x2e4] ss:$16 sps:$4 sm:$0xff]  }
  0x91   :  { %1529 = vmatprep.subr.bf16.mxu1 %v2542_v10  ;;  %v2588_v10 = vld [vmem:[#allocation7 + $0x2e0] ss:$16 sps:$4 sm:$0xff]  }
  0x92   :  { %1649 = vmatpush1.bf16.msra.mxu0 %v2531_v5  ;;  %v2587_v5 = vld [vmem:[#allocation7 + $0x2cc] ss:$16 sps:$4 sm:$0xff]  }
  0x93   :  { %1650 = vmatprep.subr.bf16.mxu0 %v2539_v7  ;;  %v2585_v7 = vld [vmem:[#allocation7 + $0x2c8] ss:$16 sps:$4 sm:$0xff]  }
  0x94   :  { %1530 = vmatpush1.bf16.msra.mxu1 %v2540_v12  ;;  %v2596_v12 = vld [vmem:[#allocation7 + $0x304] ss:$16 sps:$4 sm:$0xff]  }
  0x95   :  { %1540 = vmatprep.subr.bf16.mxu1 %v2548_v14  ;;  %v2594_v14 = vld [vmem:[#allocation7 + $0x300] ss:$16 sps:$4 sm:$0xff]  }
  0x96   :  { %1651 = vmatpush1.bf16.msra.mxu0 %v2537_v9  ;;  %v2593_v9 = vld [vmem:[#allocation7 + $0x2ec] ss:$16 sps:$4 sm:$0xff]  }
  0x97   :  { %1652 = vmatprep.subr.bf16.mxu0 %v2545_v11  ;;  %v2591_v11 = vld [vmem:[#allocation7 + $0x2e8] ss:$16 sps:$4 sm:$0xff]  }
  0x9a   :  { %1653 = vmatpush1.bf16.msra.mxu0 %v2543_v13  ;;  %v2599_v13 = vld [vmem:[#allocation7 + $0x30c] ss:$16 sps:$4 sm:$0xff]  }
  0x9b   :  { %1663 = vmatprep.subr.bf16.mxu0 %v2551_v15  ;;  %v2597_v15 = vld [vmem:[#allocation7 + $0x308] ss:$16 sps:$4 sm:$0xff]  }
 0x128   :  { %v224_v24 = vpop.f32.mrb[0].mxu0 }
 0x129   :  { %v225_v25 = vadd.f32 %v224_v24, %v99_v21  ;;  %v226_v26 = vpop.f32.mrb[1].mxu0  ;;  %v2605_v21 = vld [vmem:[#allocation7 + $0x32c] ss:$16 sps:$4 sm:$0xff]   ;;  %v2603_v24 = vld [vmem:[#allocation7 + $0x328] ss:$16 sps:$4 sm:$0xff]  }
 0x12a   :  { %v227_v28 = vadd.f32 %v226_v26, %v103_v23  ;;  %v228_v29 = vpop.f32.mrb[2].mxu0  ;;  %v3012_v32 = vpop.f32.mrb[0].mxu1  ;;  %v2600_v23 = vld [vmem:[#allocation7 + $0x320] ss:$16 sps:$4 sm:$0xff]   ;;  %v2611_v26 = vld [vmem:[#allocation7 + $0x34c] ss:$16 sps:$4 sm:$0xff]  }
 0x12b   :  { %v313_v30 = vmax.f32 %v225_v25, 0.0  ;;  %v229_v31 = vpop.f32.mrb[3].mxu0  ;;  %v267_v34 = vpop.f32.mrb[1].mxu1  ;;  %v2608_v25 = vld [vmem:[#allocation7 + $0x344] ss:$16 sps:$4 sm:$0xff]  }
 0x12c   :  { %v314_v33 = vmax.f32 %v227_v28, 0.0  ;;  %v268_v35 = vadd.f32 %v267_v34, %v111_v27  ;;  %v269_v36 = vpop.f32.mrb[2].mxu1  ;;  %v2606_v27 = vld [vmem:[#allocation7 + $0x340] ss:$16 sps:$4 sm:$0xff]   ;;  %v2609_v28 = vld [vmem:[#allocation7 + $0x348] ss:$16 sps:$4 sm:$0xff]  }
 0x12d   :  { %v270_v40 = vpop.f32.mrb[3].mxu1  ;;  %v319_v41 = vpack.c.bf16 %v313_v30, %v313_v30  ;;  %v2614_v29 = vld [vmem:[#allocation7 + $0x364] ss:$16 sps:$4 sm:$0xff]   ;;  %v2617_v30 = vld [vmem:[#allocation7 + $0x36c] ss:$16 sps:$4 sm:$0xff]   ;;  %v106_v36 = vsub.s32 2, %v2993_v17 }
 0x12e   :  { %v320_v37 = vpack.c.bf16 %v314_v33, %v314_v33  ;;  %v316_v44 = vmax.f32 %v268_v35, 0.0  ;;  %v2612_v31 = vld [vmem:[#allocation7 + $0x360] ss:$16 sps:$4 sm:$0xff]   ;;  %v2615_v33 = vld [vmem:[#allocation7 + $0x368] ss:$16 sps:$4 sm:$0xff]  }
 0x12f   :  { %v2620_v34 = vld [vmem:[#allocation7 + $0x384] ss:$16 sps:$4 sm:$0xff]   ;;  %v2623_v35 = vld [vmem:[#allocation7 + $0x38c] ss:$16 sps:$4 sm:$0xff]  }
 0x130   :  { %1531 = vmatprep.mubr.bf16.mxu1 %v320_v37  ;;  %1654 = vmatprep.mubr.bf16.mxu0 %v320_v37  ;;  %v3014_v45 = vpop.f32.mrb[4].mxu0  ;;  %v322_v46 = vpack.c.bf16 %v316_v44, %v316_v44  ;;  %v2618_v37 = vld [vmem:[#allocation7 + $0x380] ss:$16 sps:$4 sm:$0xff]   ;;  %v2629_v40 = vld [vmem:[#allocation7 + $0x3ac] ss:$16 sps:$4 sm:$0xff]  }
 0x131   :  { %1532 = vmatmul.mubr.bf16.vlgmr.msra.gmra.mrb[4].mxu1 %v319_v41  ;;  %1655 = vmatmul.mubr.bf16.vlgmr.msra.gmra.mrb[8].mxu0 %v319_v41  ;;  %v3016_v47 = vpop.f32.mrb[5].mxu0  ;;  %v118_v41 = vsub.s32 5, %v2993_v17  ;;  %v2627_v44 = vld [vmem:[#allocation7 + $0x3a8] ss:$16 sps:$4 sm:$0xff]  }
 0x132   :  { %1541 = vmatpush1.bf16.msra.mxu1 %v2546_v38  ;;  %1664 = vmatpush1.bf16.msra.mxu0 %v2549_v39  ;;  %v310_v50 = vpop.f32.mrb[6].mxu0  ;;  %v2621_v38 = vld [vmem:[#allocation7 + $0x388] ss:$16 sps:$4 sm:$0xff]   ;;  %v2626_v39 = vld [vmem:[#allocation7 + $0x3a4] ss:$16 sps:$4 sm:$0xff]  }
 0x133   :  { %1542 = vmatprep.subr.bf16.mxu1 %v2554_v42  ;;  %1665 = vmatprep.subr.bf16.mxu0 %v2557_v43  ;;  %v311_v53 = vpop.f32.mrb[7].mxu0  ;;  %v107_v42 = vrot.slane %v2999_v19, %v106_v36  ;;  %v2624_v43 = vld [vmem:[#allocation7 + $0x3a0] ss:$16 sps:$4 sm:$0xff]  }
 0x134   :  { %1572 = vmatprep.mubr.bf16.mxu1 %v322_v46  ;;  %1695 = vmatprep.mubr.bf16.mxu0 %v322_v46  ;;  %v2632_v46 = vld [vmem:[#allocation7 + $0x3c4] ss:$16 sps:$4 sm:$0xff]  }
 0x135   :  { %v266_v50 = vadd.f32 %v3012_v32, %v107_v42  ;;  %v2638_v53 = vld [vmem:[#allocation7 + $0x3e4] ss:$16 sps:$4 sm:$0xff]   ;;  %v2699_v42 = vld [vmem:[#allocation7 + $0x528] ss:$16 sps:$4 sm:$0xff]  }
 0x136   :  { %1543 = vmatpush1.bf16.msra.mxu1 %v2552_v48  ;;  %1666 = vmatpush1.bf16.msra.mxu0 %v2555_v49  ;;  %v2635_v48 = vld [vmem:[#allocation7 + $0x3cc] ss:$16 sps:$4 sm:$0xff]   ;;  %v119_v49 = vrot.slane %v2999_v19, %v118_v41  ;;  %v2696_v41 = vld [vmem:[#allocation7 + $0x520] ss:$16 sps:$4 sm:$0xff]  }
 0x137   :  { %1544 = vmatprep.subr.bf16.mxu1 %v2560_v51  ;;  %1667 = vmatprep.subr.bf16.mxu0 %v2563_v52  ;;  %v2630_v51 = vld [vmem:[#allocation7 + $0x3c0] ss:$16 sps:$4 sm:$0xff]   ;;  %v2633_v52 = vld [vmem:[#allocation7 + $0x3c8] ss:$16 sps:$4 sm:$0xff]  }
 0x13a   :  { %1545 = vmatpush1.bf16.msra.mxu1 %v2558_v54  ;;  %1668 = vmatpush1.bf16.msra.mxu0 %v2561_v55  ;;  %v2641_v54 = vld [vmem:[#allocation7 + $0x3ec] ss:$16 sps:$4 sm:$0xff]   ;;  %v309_v55 = vadd.f32 %v3016_v47, %v119_v49  ;;  %v2710_v49 = vld [vmem:[#allocation7 + $0x564] ss:$16 sps:$4 sm:$0xff]  }
 0x13b   :  { %1546 = vmatprep.subr.bf16.mxu1 %v2566_v56  ;;  %1669 = vmatprep.subr.bf16.mxu0 %v2569_v57  ;;  %v315_v56 = vmax.f32 %v266_v50, 0.0  ;;  %v2636_v57 = vld [vmem:[#allocation7 + $0x3e0] ss:$16 sps:$4 sm:$0xff]   ;;  %v2713_v50 = vld [vmem:[#allocation7 + $0x56c] ss:$16 sps:$4 sm:$0xff]  }
 0x13c   :  { %v318_v32 = vmax.f32 %v309_v55, 0.0  ;;  %v2714_v55 = vld [vmem:[#allocation7 + $0x580] ss:$16 sps:$4 sm:$0xff]  }
 0x13e   :  { %1547 = vmatpush1.bf16.msra.mxu1 %v2564_v58  ;;  %1670 = vmatpush1.bf16.msra.mxu0 %v2567_v59  ;;  %v2639_v58 = vld [vmem:[#allocation7 + $0x3e8] ss:$16 sps:$4 sm:$0xff]   ;;  %v2644_v59 = vld [vmem:[#allocation7 + $0x404] ss:$16 sps:$4 sm:$0xff]   ;;  %v324_v47 = vpack.c.bf16 %v318_v32, %v318_v32 }
 0x13f   :  { %1548 = vmatprep.subr.bf16.mxu1 %v2572_v60  ;;  %1671 = vmatprep.subr.bf16.mxu0 %v2575_v61  ;;  %v2647_v60 = vld [vmem:[#allocation7 + $0x40c] ss:$16 sps:$4 sm:$0xff]   ;;  %v321_v61 = vpack.c.bf16 %v315_v56, %v315_v56  ;;  %v2717_v56 = vld [vmem:[#allocation7 + $0x588] ss:$16 sps:$4 sm:$0xff]  }
 0x140   :  { %v2723_v32 = vld [vmem:[#allocation7 + $0x5a8] ss:$16 sps:$4 sm:$0xff]  }
 0x142   :  { %1549 = vmatpush1.bf16.msra.mxu1 %v2570_v62  ;;  %1672 = vmatpush1.bf16.msra.mxu0 %v2573_v63  ;;  %v2642_v62 = vld [vmem:[#allocation7 + $0x400] ss:$16 sps:$4 sm:$0xff]   ;;  %v2645_v63 = vld [vmem:[#allocation7 + $0x408] ss:$16 sps:$4 sm:$0xff]  }
 0x143   :  { %1550 = vmatprep.subr.bf16.mxu1 %v2578_v0  ;;  %1673 = vmatprep.subr.bf16.mxu0 %v2581_v1  ;;  %v2650_v0 = vld [vmem:[#allocation7 + $0x424] ss:$16 sps:$4 sm:$0xff]   ;;  %v2653_v1 = vld [vmem:[#allocation7 + $0x42c] ss:$16 sps:$4 sm:$0xff]  }
 0x146   :  { %1551 = vmatpush1.bf16.msra.mxu1 %v2576_v2  ;;  %1674 = vmatpush1.bf16.msra.mxu0 %v2579_v3  ;;  %v2648_v2 = vld [vmem:[#allocation7 + $0x420] ss:$16 sps:$4 sm:$0xff]   ;;  %v2651_v3 = vld [vmem:[#allocation7 + $0x428] ss:$16 sps:$4 sm:$0xff]  }
 0x147   :  { %1552 = vmatprep.subr.bf16.mxu1 %v2584_v4  ;;  %1675 = vmatprep.subr.bf16.mxu0 %v2587_v5  ;;  %v2656_v4 = vld [vmem:[#allocation7 + $0x444] ss:$16 sps:$4 sm:$0xff]   ;;  %v2659_v5 = vld [vmem:[#allocation7 + $0x44c] ss:$16 sps:$4 sm:$0xff]  }
 0x14a   :  { %1553 = vmatpush1.bf16.msra.mxu1 %v2582_v6  ;;  %1676 = vmatpush1.bf16.msra.mxu0 %v2585_v7  ;;  %v2654_v6 = vld [vmem:[#allocation7 + $0x440] ss:$16 sps:$4 sm:$0xff]   ;;  %v2657_v7 = vld [vmem:[#allocation7 + $0x448] ss:$16 sps:$4 sm:$0xff]  }
 0x14b   :  { %1554 = vmatprep.subr.bf16.mxu1 %v2590_v8  ;;  %1677 = vmatprep.subr.bf16.mxu0 %v2593_v9  ;;  %v2662_v8 = vld [vmem:[#allocation7 + $0x464] ss:$16 sps:$4 sm:$0xff]   ;;  %v2665_v9 = vld [vmem:[#allocation7 + $0x46c] ss:$16 sps:$4 sm:$0xff]  }
 0x14e   :  { %1555 = vmatpush1.bf16.msra.mxu1 %v2588_v10  ;;  %1678 = vmatpush1.bf16.msra.mxu0 %v2591_v11  ;;  %v2660_v10 = vld [vmem:[#allocation7 + $0x460] ss:$16 sps:$4 sm:$0xff]   ;;  %v2663_v11 = vld [vmem:[#allocation7 + $0x468] ss:$16 sps:$4 sm:$0xff]  }
 0x14f   :  { %1556 = vmatprep.subr.bf16.mxu1 %v2596_v12  ;;  %1679 = vmatprep.subr.bf16.mxu0 %v2599_v13  ;;  %v2668_v12 = vld [vmem:[#allocation7 + $0x484] ss:$16 sps:$4 sm:$0xff]   ;;  %v2671_v13 = vld [vmem:[#allocation7 + $0x48c] ss:$16 sps:$4 sm:$0xff]  }
 0x152   :  { %1557 = vmatpush1.bf16.msra.mxu1 %v2594_v14  ;;  %1680 = vmatpush1.bf16.msra.mxu0 %v2597_v15  ;;  %v2666_v14 = vld [vmem:[#allocation7 + $0x480] ss:$16 sps:$4 sm:$0xff]   ;;  %v2669_v15 = vld [vmem:[#allocation7 + $0x488] ss:$16 sps:$4 sm:$0xff]  }
 0x153   :  { %1558 = vmatprep.subr.bf16.mxu1 %v2602_v16  ;;  %1681 = vmatprep.subr.bf16.mxu0 %v2605_v21  ;;  %v2674_v16 = vld [vmem:[#allocation7 + $0x4a4] ss:$16 sps:$4 sm:$0xff]   ;;  %v2677_v21 = vld [vmem:[#allocation7 + $0x4ac] ss:$16 sps:$4 sm:$0xff]  }
 0x156   :  { %1559 = vmatpush1.bf16.msra.mxu1 %v2600_v23  ;;  %1682 = vmatpush1.bf16.msra.mxu0 %v2603_v24  ;;  %v2672_v23 = vld [vmem:[#allocation7 + $0x4a0] ss:$16 sps:$4 sm:$0xff]   ;;  %v2675_v24 = vld [vmem:[#allocation7 + $0x4a8] ss:$16 sps:$4 sm:$0xff]  }
 0x157   :  { %1560 = vmatprep.subr.bf16.mxu1 %v2608_v25  ;;  %1683 = vmatprep.subr.bf16.mxu0 %v2611_v26  ;;  %v2680_v25 = vld [vmem:[#allocation7 + $0x4c4] ss:$16 sps:$4 sm:$0xff]   ;;  %v2683_v26 = vld [vmem:[#allocation7 + $0x4cc] ss:$16 sps:$4 sm:$0xff]  }
 0x15a   :  { %1561 = vmatpush1.bf16.msra.mxu1 %v2606_v27  ;;  %1684 = vmatpush1.bf16.msra.mxu0 %v2609_v28  ;;  %v2678_v27 = vld [vmem:[#allocation7 + $0x4c0] ss:$16 sps:$4 sm:$0xff]   ;;  %v2681_v28 = vld [vmem:[#allocation7 + $0x4c8] ss:$16 sps:$4 sm:$0xff]  }
 0x15b   :  { %1562 = vmatprep.subr.bf16.mxu1 %v2614_v29  ;;  %1685 = vmatprep.subr.bf16.mxu0 %v2617_v30  ;;  %v2686_v29 = vld [vmem:[#allocation7 + $0x4e4] ss:$16 sps:$4 sm:$0xff]   ;;  %v2689_v30 = vld [vmem:[#allocation7 + $0x4ec] ss:$16 sps:$4 sm:$0xff]  }
 0x15e   :  { %1563 = vmatpush1.bf16.msra.mxu1 %v2612_v31  ;;  %1686 = vmatpush1.bf16.msra.mxu0 %v2615_v33  ;;  %v2684_v31 = vld [vmem:[#allocation7 + $0x4e0] ss:$16 sps:$4 sm:$0xff]   ;;  %v2687_v33 = vld [vmem:[#allocation7 + $0x4e8] ss:$16 sps:$4 sm:$0xff]  }
 0x15f   :  { %1564 = vmatprep.subr.bf16.mxu1 %v2620_v34  ;;  %1687 = vmatprep.subr.bf16.mxu0 %v2623_v35  ;;  %v2692_v34 = vld [vmem:[#allocation7 + $0x504] ss:$16 sps:$4 sm:$0xff]   ;;  %v2695_v35 = vld [vmem:[#allocation7 + $0x50c] ss:$16 sps:$4 sm:$0xff]  }
 0x162   :  { %1565 = vmatpush1.bf16.msra.mxu1 %v2618_v37  ;;  %1688 = vmatpush1.bf16.msra.mxu0 %v2621_v38  ;;  %v2690_v37 = vld [vmem:[#allocation7 + $0x500] ss:$16 sps:$4 sm:$0xff]   ;;  %v2693_v38 = vld [vmem:[#allocation7 + $0x508] ss:$16 sps:$4 sm:$0xff]  }
 0x163   :  { %1566 = vmatprep.subr.bf16.mxu1 %v2626_v39  ;;  %1689 = vmatprep.subr.bf16.mxu0 %v2629_v40  ;;  %v2698_v39 = vld [vmem:[#allocation7 + $0x524] ss:$16 sps:$4 sm:$0xff]   ;;  %v2701_v40 = vld [vmem:[#allocation7 + $0x52c] ss:$16 sps:$4 sm:$0xff]  }
 0x166   :  { %1567 = vmatpush1.bf16.msra.mxu1 %v2624_v43  ;;  %1690 = vmatpush1.bf16.msra.mxu0 %v2627_v44  ;;  %v2704_v43 = vld [vmem:[#allocation7 + $0x544] ss:$16 sps:$4 sm:$0xff]   ;;  %v2707_v44 = vld [vmem:[#allocation7 + $0x54c] ss:$16 sps:$4 sm:$0xff]  }
 0x167   :  { %1568 = vmatprep.subr.bf16.mxu1 %v2632_v46  ;;  %1691 = vmatprep.subr.bf16.mxu0 %v2635_v48  ;;  %v2702_v46 = vld [vmem:[#allocation7 + $0x540] ss:$16 sps:$4 sm:$0xff]   ;;  %v2705_v48 = vld [vmem:[#allocation7 + $0x548] ss:$16 sps:$4 sm:$0xff]  }
 0x16a   :  { %1569 = vmatpush1.bf16.msra.mxu1 %v2630_v51  ;;  %1692 = vmatpush1.bf16.msra.mxu0 %v2633_v52  ;;  %v2708_v51 = vld [vmem:[#allocation7 + $0x560] ss:$16 sps:$4 sm:$0xff]   ;;  %v2711_v52 = vld [vmem:[#allocation7 + $0x568] ss:$16 sps:$4 sm:$0xff]  }
 0x16b   :  { %1570 = vmatprep.subr.bf16.mxu1 %v2638_v53  ;;  %1693 = vmatprep.subr.bf16.mxu0 %v2641_v54  ;;  %v2716_v53 = vld [vmem:[#allocation7 + $0x584] ss:$16 sps:$4 sm:$0xff]   ;;  %v2719_v54 = vld [vmem:[#allocation7 + $0x58c] ss:$16 sps:$4 sm:$0xff]  }
 0x16e   :  { %1571 = vmatpush1.bf16.msra.mxu1 %v2636_v57  ;;  %1694 = vmatpush1.bf16.msra.mxu0 %v2639_v58  ;;  %v114_v57 = vsub.s32 4, %v2993_v17  ;;  %v2722_v58 = vld [vmem:[#allocation7 + $0x5a4] ss:$16 sps:$4 sm:$0xff]  }
 0x16f   :  { %1581 = vmatprep.subr.bf16.mxu1 %v2644_v59  ;;  %1704 = vmatprep.subr.bf16.mxu0 %v2647_v60  ;;  %v2725_v59 = vld [vmem:[#allocation7 + $0x5ac] ss:$16 sps:$4 sm:$0xff]   ;;  %v2720_v60 = vld [vmem:[#allocation7 + $0x5a0] ss:$16 sps:$4 sm:$0xff]  }
 0x171   :  { %1573 = vmatmul.mubr.bf16.vlgmr.msra.gmra.mrb[4].mxu1 %v321_v61  ;;  %1696 = vmatmul.mubr.bf16.vlgmr.msra.gmra.mrb[8].mxu0 %v321_v61  ;;  %v115_v61 = vrot.slane %v2999_v19, %v114_v57  ;;  %v2738_v19 = vld [vmem:[#allocation8 + $0x40] sm:$0xff]  }
 0x172   :  { %1582 = vmatpush1.bf16.msra.mxu1 %v2642_v62  ;;  %1705 = vmatpush1.bf16.msra.mxu0 %v2645_v63  ;;  %v2728_v62 = vld [vmem:[#allocation7 + $0x5c4] ss:$16 sps:$4 sm:$0xff]   ;;  %v2731_v63 = vld [vmem:[#allocation7 + $0x5cc] ss:$16 sps:$4 sm:$0xff]  }
 0x173   :  { %1583 = vmatprep.subr.bf16.mxu1 %v2650_v0  ;;  %1706 = vmatprep.subr.bf16.mxu0 %v2653_v1  ;;  %v2726_v0 = vld [vmem:[#allocation7 + $0x5c0] ss:$16 sps:$4 sm:$0xff]   ;;  %v2729_v1 = vld [vmem:[#allocation7 + $0x5c8] ss:$16 sps:$4 sm:$0xff]  }
 0x174   :  { %1613 = vmatprep.mubr.bf16.mxu1 %v324_v47  ;;  %1736 = vmatprep.mubr.bf16.mxu0 %v324_v47  ;;  %v307_v47 = vadd.f32 %v3014_v45, %v115_v61  ;;  %v2742_v45 = vld [vmem:[#allocation8 + $0x48] sm:$0xff]  }
 0x176   :  { %1584 = vmatpush1.bf16.msra.mxu1 %v2648_v2  ;;  %1707 = vmatpush1.bf16.msra.mxu0 %v2651_v3  ;;  %v2734_v2 = vld [vmem:[#allocation7 + $0x5e4] ss:$16 sps:$4 sm:$0xff]   ;;  %v2737_v3 = vld [vmem:[#allocation7 + $0x5ec] ss:$16 sps:$4 sm:$0xff]  }
 0x177   :  { %1585 = vmatprep.subr.bf16.mxu1 %v2656_v4  ;;  %1708 = vmatprep.subr.bf16.mxu0 %v2659_v5  ;;  %v2732_v4 = vld [vmem:[#allocation7 + $0x5e0] ss:$16 sps:$4 sm:$0xff]   ;;  %v2735_v5 = vld [vmem:[#allocation7 + $0x5e8] ss:$16 sps:$4 sm:$0xff]  }
 0x17a   :  { %1586 = vmatpush1.bf16.msra.mxu1 %v2654_v6  ;;  %1709 = vmatpush1.bf16.msra.mxu0 %v2657_v7  ;;  %v317_v6 = vmax.f32 %v307_v47, 0.0  ;;  %v2739_v7 = vld [vmem:[#allocation8 + $0xc0] sm:$0xff]  }
 0x17b   :  { %1587 = vmatprep.subr.bf16.mxu1 %v2662_v8  ;;  %1710 = vmatprep.subr.bf16.mxu0 %v2665_v9  ;;  %v2740_v8 = vld [vmem:[#allocation8] sm:$0xff]  }
 0x17c   :  { %v2741_v9 = vld [vmem:[#allocation8 + $0x80] sm:$0xff]  }
 0x17e   :  { %1588 = vmatpush1.bf16.msra.mxu1 %v2660_v10  ;;  %1711 = vmatpush1.bf16.msra.mxu0 %v2663_v11  ;;  %v323_v10 = vpack.c.bf16 %v317_v6, %v317_v6  ;;  %v2743_v11 = vld [vmem:[#allocation8 + $0xc8] sm:$0xff]  }
 0x17f   :  { %1589 = vmatprep.subr.bf16.mxu1 %v2668_v12  ;;  %1712 = vmatprep.subr.bf16.mxu0 %v2671_v13  ;;  %v2744_v12 = vld [vmem:[#allocation8 + $0x8] sm:$0xff]  }
 0x180   :  { %v2745_v13 = vld [vmem:[#allocation8 + $0x88] sm:$0xff]  }
 0x182   :  { %1590 = vmatpush1.bf16.msra.mxu1 %v2666_v14  ;;  %1713 = vmatpush1.bf16.msra.mxu0 %v2669_v15  ;;  %v2746_v14 = vld [vmem:[#allocation8 + $0x50] sm:$0xff]  }
 0x183   :  { %1591 = vmatprep.subr.bf16.mxu1 %v2674_v16  ;;  %1714 = vmatprep.subr.bf16.mxu0 %v2677_v21  ;;  %v2747_v15 = vld [vmem:[#allocation8 + $0xd0] sm:$0xff]  }
 0x184   :  { %v2748_v16 = vld [vmem:[#allocation8 + $0x10] sm:$0xff]  }
 0x185   :  { %v2749_v21 = vld [vmem:[#allocation8 + $0x90] sm:$0xff]  }
 0x186   :  { %1592 = vmatpush1.bf16.msra.mxu1 %v2672_v23  ;;  %1715 = vmatpush1.bf16.msra.mxu0 %v2675_v24  ;;  %v2750_v23 = vld [vmem:[#allocation8 + $0x58] sm:$0xff]  }
 0x187   :  { %1593 = vmatprep.subr.bf16.mxu1 %v2680_v25  ;;  %1716 = vmatprep.subr.bf16.mxu0 %v2683_v26  ;;  %v2751_v24 = vld [vmem:[#allocation8 + $0xd8] sm:$0xff]  }
 0x188   :  { %v2752_v25 = vld [vmem:[#allocation8 + $0x18] sm:$0xff]  }
 0x189   :  { %v2753_v26 = vld [vmem:[#allocation8 + $0x98] sm:$0xff]  }
 0x18a   :  { %1594 = vmatpush1.bf16.msra.mxu1 %v2678_v27  ;;  %1717 = vmatpush1.bf16.msra.mxu0 %v2681_v28  ;;  %v2754_v27 = vld [vmem:[#allocation8 + $0x60] sm:$0xff]  }
 0x18b   :  { %1595 = vmatprep.subr.bf16.mxu1 %v2686_v29  ;;  %1718 = vmatprep.subr.bf16.mxu0 %v2689_v30  ;;  %v2755_v28 = vld [vmem:[#allocation8 + $0xe0] sm:$0xff]  }
 0x18c   :  { %v2756_v29 = vld [vmem:[#allocation8 + $0x20] sm:$0xff]  }
 0x18d   :  { %v2757_v30 = vld [vmem:[#allocation8 + $0xa0] sm:$0xff]  }
 0x18e   :  { %1596 = vmatpush1.bf16.msra.mxu1 %v2684_v31  ;;  %1719 = vmatpush1.bf16.msra.mxu0 %v2687_v33  ;;  %v2758_v31 = vld [vmem:[#allocation8 + $0x68] sm:$0xff]  }
 0x18f   :  { %1597 = vmatprep.subr.bf16.mxu1 %v2692_v34  ;;  %1720 = vmatprep.subr.bf16.mxu0 %v2695_v35  ;;  %v2759_v33 = vld [vmem:[#allocation8 + $0xe8] sm:$0xff]  }
 0x190   :  { %v2760_v34 = vld [vmem:[#allocation8 + $0x28] sm:$0xff]  }
 0x191   :  { %v2761_v35 = vld [vmem:[#allocation8 + $0xa8] sm:$0xff]  }
 0x192   :  { %1598 = vmatpush1.bf16.msra.mxu1 %v2690_v37  ;;  %1721 = vmatpush1.bf16.msra.mxu0 %v2693_v38  ;;  %v2762_v37 = vld [vmem:[#allocation8 + $0x70] sm:$0xff]  }
 0x193   :  { %1599 = vmatprep.subr.bf16.mxu1 %v2698_v39  ;;  %1722 = vmatprep.subr.bf16.mxu0 %v2701_v40  ;;  %v2763_v38 = vld [vmem:[#allocation8 + $0xf0] sm:$0xff]  }
 0x194   :  { %v2764_v39 = vld [vmem:[#allocation8 + $0x30] sm:$0xff]  }
 0x195   :  { %v2765_v40 = vld [vmem:[#allocation8 + $0xb0] sm:$0xff]  }
 0x196   :  { %1600 = vmatpush1.bf16.msra.mxu1 %v2696_v41  ;;  %1723 = vmatpush1.bf16.msra.mxu0 %v2699_v42  ;;  %v2766_v41 = vld [vmem:[#allocation8 + $0x78] sm:$0xff]  }
 0x197   :  { %1601 = vmatprep.subr.bf16.mxu1 %v2704_v43  ;;  %1724 = vmatprep.subr.bf16.mxu0 %v2707_v44  ;;  %v2767_v42 = vld [vmem:[#allocation8 + $0xf8] sm:$0xff]  }
 0x198   :  { %v2768_v43 = vld [vmem:[#allocation8 + $0x38] sm:$0xff]  }
 0x199   :  { %v2769_v44 = vld [vmem:[#allocation8 + $0xb8] sm:$0xff]  }
 0x19a   :  { %1602 = vmatpush1.bf16.msra.mxu1 %v2702_v46  ;;  %1725 = vmatpush1.bf16.msra.mxu0 %v2705_v48  ;;  %v517_v46 = vld [vmem:[%s3059_s4] sm:$0xf] }
 0x19b   :  { %1603 = vmatprep.subr.bf16.mxu1 %v2710_v49  ;;  %1726 = vmatprep.subr.bf16.mxu0 %v2713_v50  ;;  %v522_v48 = vrot.slane %v517_v46, %v98_v18  ;;  %v530_v49 = vrot.slane %v517_v46, %v106_v36  ;;  %v526_v50 = vrot.slane %v517_v46, %v102_v20 }
 0x19e   :  { %1604 = vmatpush1.bf16.msra.mxu1 %v2708_v51  ;;  %1727 = vmatpush1.bf16.msra.mxu0 %v2711_v52  ;;  %v534_v51 = vrot.slane %v517_v46, %v110_v22 }
 0x19f   :  { %1605 = vmatprep.subr.bf16.mxu1 %v2716_v53  ;;  %1728 = vmatprep.subr.bf16.mxu0 %v2719_v54 }
 0x1a2   :  { %1606 = vmatpush1.bf16.msra.mxu1 %v2714_v55  ;;  %1729 = vmatpush1.bf16.msra.mxu0 %v2717_v56 }
 0x1a3   :  { %1607 = vmatprep.subr.bf16.mxu1 %v2722_v58  ;;  %1730 = vmatprep.subr.bf16.mxu0 %v2725_v59 }
 0x1a6   :  { %1608 = vmatpush1.bf16.msra.mxu1 %v2720_v60  ;;  %1731 = vmatpush1.bf16.msra.mxu0 %v2723_v32 }
 0x1a7   :  { %1609 = vmatprep.subr.bf16.mxu1 %v2728_v62  ;;  %1732 = vmatprep.subr.bf16.mxu0 %v2731_v63 }
 0x1aa   :  { %1610 = vmatpush1.bf16.msra.mxu1 %v2726_v0  ;;  %1733 = vmatpush1.bf16.msra.mxu0 %v2729_v1 }
 0x1ab   :  { %1611 = vmatprep.subr.bf16.mxu1 %v2734_v2  ;;  %1734 = vmatprep.subr.bf16.mxu0 %v2737_v3  ;;  %v2323_v3 = vld [vmem:[%s3061_s6] ss:$0 sm:$0xff] }
 0x1ae   :  { %1612 = vmatpush1.bf16.msra.mxu1 %v2732_v4  ;;  %1735 = vmatpush1.bf16.msra.mxu0 %v2735_v5 }
 0x1af   :  { %2356 = vmatprep.subr.bf16.mxu1 %v2738_v19  ;;  %2378 = vmatprep.subr.bf16.mxu0 %v2739_v7 }
 0x1b1   :  { %1614 = vmatmul.mubr.bf16.vlgmr.msra.gmra.mrb[4].mxu1 %v323_v10  ;;  %1737 = vmatmul.mubr.bf16.vlgmr.msra.gmra.mrb[8].mxu0 %v323_v10 }
 0x1b2   :  { %2357 = vmatpush3.bf16.msra.mxu1 %v2740_v8  ;;  %2379 = vmatpush3.bf16.msra.mxu0 %v2741_v9 }
 0x1b3   :  { %2358 = vmatprep.subr.bf16.mxu1 %v2742_v45  ;;  %2380 = vmatprep.subr.bf16.mxu0 %v2743_v11 }
 0x1b6   :  { %2359 = vmatpush3.bf16.msra.mxu1 %v2744_v12  ;;  %2381 = vmatpush3.bf16.msra.mxu0 %v2745_v13 }
 0x1b7   :  { %2360 = vmatprep.subr.bf16.mxu1 %v2746_v14  ;;  %2382 = vmatprep.subr.bf16.mxu0 %v2747_v15 }
 0x1ba   :  { %2361 = vmatpush3.bf16.msra.mxu1 %v2748_v16  ;;  %2383 = vmatpush3.bf16.msra.mxu0 %v2749_v21 }
 0x1bb   :  { %2362 = vmatprep.subr.bf16.mxu1 %v2750_v23  ;;  %2384 = vmatprep.subr.bf16.mxu0 %v2751_v24 }
 0x1be   :  { %2363 = vmatpush3.bf16.msra.mxu1 %v2752_v25  ;;  %2385 = vmatpush3.bf16.msra.mxu0 %v2753_v26 }
 0x1bf   :  { %2364 = vmatprep.subr.bf16.mxu1 %v2754_v27  ;;  %2386 = vmatprep.subr.bf16.mxu0 %v2755_v28 }
 0x1c2   :  { %2365 = vmatpush3.bf16.msra.mxu1 %v2756_v29  ;;  %2387 = vmatpush3.bf16.msra.mxu0 %v2757_v30 }
 0x1c3   :  { %2366 = vmatprep.subr.bf16.mxu1 %v2758_v31  ;;  %2388 = vmatprep.subr.bf16.mxu0 %v2759_v33 }
 0x1c6   :  { %2367 = vmatpush3.bf16.msra.mxu1 %v2760_v34  ;;  %2389 = vmatpush3.bf16.msra.mxu0 %v2761_v35 }
 0x1c7   :  { %2368 = vmatprep.subr.bf16.mxu1 %v2762_v37  ;;  %2390 = vmatprep.subr.bf16.mxu0 %v2763_v38 }
 0x1ca   :  { %2369 = vmatpush3.bf16.msra.mxu1 %v2764_v39  ;;  %2391 = vmatpush3.bf16.msra.mxu0 %v2765_v40 }
 0x1cb   :  { %2370 = vmatprep.subr.bf16.mxu1 %v2766_v41  ;;  %2392 = vmatprep.subr.bf16.mxu0 %v2767_v42 }
 0x1ce   :  { %2371 = vmatpush3.bf16.msra.mxu1 %v2768_v43  ;;  %2393 = vmatpush3.bf16.msra.mxu0 %v2769_v44 }
 0x284   :  { %v1615_v52 = vpop.f32.mrb[4].mxu1  ;;  %v1738_v53 = vpop.f32.mrb[8].mxu0 }
 0x285   :  { %v2400_v54 = vadd.f32 %v1615_v52, %v522_v48  ;;  %v2402_v55 = vadd.f32 %v1738_v53, %v530_v49  ;;  %v1617_v56 = vpop.f32.mrb[5].mxu1  ;;  %v1740_v57 = vpop.f32.mrb[9].mxu0 }
 0x286   :  { %v2401_v58 = vadd.f32 %v1617_v56, %v526_v50  ;;  %v2403_v59 = vadd.f32 %v1740_v57, %v534_v51  ;;  %v1619_v60 = vpop.f32.mrb[6].mxu1  ;;  %v1742_v32 = vpop.f32.mrb[10].mxu0 }
 0x287   :  { %v1745_v18 = vmax.f32 %v2400_v54, 0.0  ;;  %v1747_v61 = vmax.f32 %v2402_v55, 0.0  ;;  %v1620_v62 = vpop.f32.mrb[7].mxu1  ;;  %v1743_v36 = vpop.f32.mrb[11].mxu0 }
 0x288   :  { %v1746_v63 = vmax.f32 %v2401_v58, 0.0  ;;  %v1748_v0 = vmax.f32 %v2403_v59, 0.0 }
 0x289   :  { %v1749_v17 = vpack.c.bf16 %v1745_v18, %v1745_v18  ;;  %v1751_v22 = vpack.c.bf16 %v1747_v61, %v1747_v61 }
 0x28a   :  { %v1750_v20 = vpack.c.bf16 %v1746_v63, %v1746_v63  ;;  %v1752_v1 = vpack.c.bf16 %v1748_v0, %v1748_v0 }
 0x28c   :  { %2048 = vmatprep.mubr.bf16.mxu1 %v1750_v20  ;;  %2088 = vmatprep.mubr.bf16.mxu0 %v1752_v1 }
 0x28d   :  { %2049 = vmatmul.mubr.bf16.vlgmr.msra.gmra.mrb[8].mxu1 %v1749_v17  ;;  %2089 = vmatmul.mubr.bf16.vlgmr.msra.gmra.mrb[12].mxu0 %v1751_v22 }
 0x360   :  { %v2372_v47 = vpop.f32.mrb[8].mxu1  ;;  %v2394_v2 = vpop.f32.mrb[12].mxu0 }
 0x361   :  { %v2373_v4 = vpop.f32.mrb[9].mxu1  ;;  %v2395_v5 = vpop.f32.mrb[13].mxu0 }
 0x362   :  { %v2374_v6 = vadd.f32 %v2373_v4, %v2372_v47  ;;  %v2396_v19 = vadd.f32 %v2395_v5, %v2394_v2  ;;  %v2375_v7 = vpop.f32.mrb[10].mxu1  ;;  %v2397_v8 = vpop.f32.mrb[14].mxu0 }
 0x363   :  { %v2376_v9 = vpop.f32.mrb[11].mxu1  ;;  %v2398_v10 = vpop.f32.mrb[15].mxu0 }
 0x364   :  { %v2051_v45 = vadd.f32 %v2374_v6, %v2323_v3 }
 0x366   :  { %v2091_v11 = vadd.f32 %v2396_v19, %v2051_v45 }
 0x368   :  { %2770 = vtanh.f32 %v2091_v11 }
 0x372   :  { %v2771_v12 = vpop.eup %2770 }
 0x373   :  { %v2097_v13 = vmul.f32 6.0, %v2771_v12 }
 0x375   :  { %2098 = vst [vmem:[#allocation10] sm:$0xff] %v2097_v13 }
 0x376   :  { %2871 = shalt.err (!%p2868_p8)
}
 0x377   :  { %s2872_s12 = scalar_lea.hbm %s3062_s7, 128 }
 0x378   :  { %p2873_p9 = scmp.ne.s32.totalorder %s3062_s7, %s2872_s12  ;;  %p2876_p10 = scmp.lt.u32.totalorder %s2872_s12, %s3062_s7 }
 0x37a   :  { %p2878_p11 = pnand %p2876_p10, %p2873_p9 }
 0x37c   :  { %2881 = shalt.err (!%p2878_p11)
}
 0x37d   :  { %2108 = dma.vmem_to_hbm [thread:$0]  %s2106_s9, 128, %s3062_s7, [#allocation4]  }
 0x37e   :  { %2888 = dma.done.wait [#allocation4], 128  }
 0x37f   :  { %2889 = vsyncadd [#allocation4], 4294967168 }
 0x380   :  { %2112 = vsyncpa [#allocation3], 1 }
 0x381   :  { %2113 = vsyncpa [#allocation6], 1 }
 0x382   :  { %2114 = vsyncpa [#allocation9], 1 }
 0x383   :  { %2115 = vsyncpa [#allocation4], 1 }

</bundles_post_ra>
